<compile_context>
chip_gen: v5e
topology: v5e:2x2
jax: 0.10.0
libtpu: 0.0.40
codegen_flags: <defaults>
</compile_context>

<pallas_src>
import jax
import jax.numpy as jnp
import numpy as np
from jax.experimental import pallas as pl
from jax.experimental.pallas import tpu as pltpu

HIDDEN_BODY = 128   # SimpleBody fc1 width
HIDDEN_FC1 = 512    # DQN fc1 width
LANE = 128          # TPU lane width: pad num_actions up to this
MAX_TB = 256        # batch-tile cap (fills v6e/v7x 256-wide MXU, fine on v5e)


def _round_up(x, m):
    return ((x + m - 1) // m) * m


def dqn_kernel(x_ref, w0_ref, b0_ref, w1_ref, b1_ref, w2_ref, b2_ref, o_ref):
    """Whole MLP on one batch tile: 3 MXU matmuls (bf16 inputs, f32 accum)."""
    x = x_ref[...]                                                    # (TB, Dp) bf16
    # body: Linear(D, 128) + ReLU   (bias add + ReLU kept in f32)
    h0 = jnp.dot(x, w0_ref[...], preferred_element_type=jnp.float32) + b0_ref[...]
    h0 = jnp.maximum(h0, 0.0).astype(jnp.bfloat16)                    # (TB, 128)
    # fc1: Linear(128, 512) + ReLU
    h1 = jnp.dot(h0, w1_ref[...], preferred_element_type=jnp.float32) + b1_ref[...]
    h1 = jnp.maximum(h1, 0.0).astype(jnp.bfloat16)                    # (TB, 512)
    # fc2: Linear(512, A_pad), no activation; lane-dense f32 store
    o_ref[...] = (jnp.dot(h1, w2_ref[...], preferred_element_type=jnp.float32)
                  + b2_ref[...]).astype(o_ref.dtype)                  # (TB, A_pad)


def _build_call(tb, d_pad, a_pad, b_pad, param_shapes, single_buffer_weights):
    s_w0, s_b0, s_w1, s_b1, s_w2, s_b2 = param_shapes

    def resident(shape):
        # Weights/biases are grid-invariant: keep them resident in VMEM.
        if single_buffer_weights:
            return pl.BlockSpec(shape, lambda i: (0, 0),
                                pipeline_mode=pl.Buffered(1))
        return pl.BlockSpec(shape, lambda i: (0, 0))

    return pl.pallas_call(
        dqn_kernel,
        out_shape=jax.ShapeDtypeStruct((b_pad, a_pad), jnp.float32),
        grid_spec=pltpu.PrefetchScalarGridSpec(
            num_scalar_prefetch=0,
            grid=(b_pad // tb,),
            in_specs=[
                pl.BlockSpec((tb, d_pad), lambda i: (i, 0)),   # x: tiled over batch
                resident(s_w0), resident(s_b0),
                resident(s_w1), resident(s_b1),
                resident(s_w2), resident(s_b2),
            ],
            out_specs=pl.BlockSpec((tb, a_pad), lambda i: (i, 0)),
        ),
        compiler_params=pltpu.CompilerParams(
            dimension_semantics=("parallel",)),
    )


def prepare_params(params, input_dim):
    """Pad + cast the f32 [in, out] params once for the kernel.

    - w0 rows zero-padded so the feature dim is a multiple of 8 (>= 8)
    - w2 columns / b2 zero-padded so the action dim is a multiple of 128
    - weights cast to bf16 (MXU inputs), biases kept f32 (added post-accum).
    """
    d_pad = max(8, _round_up(input_dim, 8))
    a = params["w2"].shape[1]
    a_pad = max(LANE, _round_up(a, LANE))

    w0 = jnp.zeros((d_pad, HIDDEN_BODY), jnp.float32).at[:input_dim, :].set(params["w0"])
    w2 = jnp.zeros((HIDDEN_FC1, a_pad), jnp.float32).at[:, :a].set(params["w2"])
    b2 = jnp.zeros((1, a_pad), jnp.float32).at[:, :a].set(params["b2"])

    return dict(
        w0=w0.astype(jnp.bfloat16), b0=params["b0"].astype(jnp.float32),
        w1=params["w1"].astype(jnp.bfloat16), b1=params["b1"].astype(jnp.float32),
        w2=w2.astype(jnp.bfloat16), b2=b2,
        d_pad=d_pad, a_pad=a_pad, num_actions=a, input_dim=input_dim,
    )


def dqn_forward(x, prepared, *, max_tb=MAX_TB):
    """x: [B, D] float32. prepared: output of prepare_params. Returns [B, A] f32."""
    B, D = x.shape
    d_pad, a_pad = prepared["d_pad"], prepared["a_pad"]
    A = prepared["num_actions"]
    assert D == prepared["input_dim"]

    # Batch tile: whole (8-padded) batch in one step when it fits, otherwise
    # max_tb-row tiles (keeps multiple parallel grid steps on large batches).
    if B <= max_tb:
        tb = max(8, _round_up(B, 8))
    else:
        tb = max_tb
    b_pad = _round_up(B, tb)

    xp = jnp.zeros((b_pad, d_pad), jnp.bfloat16)
    xp = xp.at[:B, :D].set(x.astype(jnp.bfloat16))

    args = (xp, prepared["w0"], prepared["b0"], prepared["w1"], prepared["b1"],
            prepared["w2"], prepared["b2"])
    param_shapes = tuple(a.shape for a in args[1:])

    try:
        call = _build_call(tb, d_pad, a_pad, b_pad, param_shapes,
                           single_buffer_weights=True)
        out = call(*args)
    except Exception:
        # pl.Buffered(1) not accepted by this jax version: identical semantics
        # with default double-buffered resident weights.
        call = _build_call(tb, d_pad, a_pad, b_pad, param_shapes,
                           single_buffer_weights=False)
        out = call(*args)

    return out[:B, :A]


def init_params(key, input_dim, num_actions):
    """Init matching PyTorch Linear's U(-1/sqrt(fan_in), 1/sqrt(fan_in)).

    Weights are returned already transposed to [in, out], f32."""
    ks = jax.random.split(key, 6)

    def linear(kw, kb, fan_in, fan_out):
        bound = 1.0 / np.sqrt(fan_in)
        w = jax.random.uniform(kw, (fan_in, fan_out), jnp.float32, -bound, bound)
        b = jax.random.uniform(kb, (1, fan_out), jnp.float32, -bound, bound)
        return w, b

    w0, b0 = linear(ks[0], ks[1], input_dim, HIDDEN_BODY)
    w1, b1 = linear(ks[2], ks[3], HIDDEN_BODY, HIDDEN_FC1)
    w2, b2 = linear(ks[4], ks[5], HIDDEN_FC1, num_actions)
    return dict(w0=w0, b0=b0, w1=w1, b1=b1, w2=w2, b2=b2)


def dqn_forward_ref(x, p):
    """Pure-JAX f32 reference of the same forward pass (unpadded params)."""
    h = jnp.maximum(x @ p["w0"] + p["b0"], 0.0)
    h = jnp.maximum(h @ p["w1"] + p["b1"], 0.0)
    return h @ p["w2"] + p["b2"]


if __name__ == "__main__":
    key = jax.random.PRNGKey(0)
    k_param, k_x, k_x2 = jax.random.split(key, 3)

    # Small example consistent with a vector observation (CartPole-like):
    # input_shape = (4,), num_actions = 2, batch = 16.
    B, D, A = 16, 4, 2
    params = init_params(k_param, D, A)
    prepared = prepare_params(params, D)

    x = jax.random.normal(k_x, (B, D), jnp.float32)
    out = jax.block_until_ready(dqn_forward(x, prepared))
    ref = dqn_forward_ref(x, params)
    assert out.shape == (B, A)
    # bf16 MXU inputs with f32 accumulation: loose tolerance vs. f32 reference.
    np.testing.assert_allclose(np.asarray(out), np.asarray(ref), rtol=5e-2, atol=5e-2)

    # Replay-sized batch: exercises the multi-step grid (tb=256) and the
    # batch/feature/action padding + output slicing path.
    B2 = 300
    x2 = jax.random.normal(k_x2, (B2, D), jnp.float32)
    out2 = jax.block_until_ready(dqn_forward(x2, prepared))
    ref2 = dqn_forward_ref(x2, params)
    assert out2.shape == (B2, A)
    np.testing.assert_allclose(np.asarray(out2), np.asarray(ref2), rtol=5e-2, atol=5e-2)

    # TODO(synk): noisy=True path (NoisyLinear / sample_noise) not implemented;
    # this covers the default deterministic-Linear configuration.
    print("KERNEL_OK")
</pallas_src>

<mosaic_0001>
module attributes {stable_mosaic.version = 11 : i64} {
  func.func @dqn_kernel(%arg0: i32, %arg1: memref<16x8xbf16, #tpu.memory_space<vmem>>, %arg2: memref<8x128xbf16, #tpu.memory_space<vmem>>, %arg3: memref<1x128xf32, #tpu.memory_space<vmem>>, %arg4: memref<128x512xbf16, #tpu.memory_space<vmem>>, %arg5: memref<1x512xf32, #tpu.memory_space<vmem>>, %arg6: memref<512x128xbf16, #tpu.memory_space<vmem>>, %arg7: memref<1x128xf32, #tpu.memory_space<vmem>>, %arg8: memref<16x128xf32, #tpu.memory_space<vmem>>) attributes {dimension_semantics = [#tpu.dimension_semantics<parallel>], iteration_bounds = array<i64: 1>, scalar_prefetch = 0 : i64, scratch_operands = 0 : i64, tpu.core_type = #tpu.core_type<tc>, window_params = [{transform_indices = @transform_0, window_bounds = array<i64: 16, 8>}, {pipeline_mode = #tpu.pipeline_mode<synchronous>, transform_indices = @transform_1, window_bounds = array<i64: 8, 128>}, {pipeline_mode = #tpu.pipeline_mode<synchronous>, transform_indices = @transform_2, window_bounds = array<i64: 1, 128>}, {pipeline_mode = #tpu.pipeline_mode<synchronous>, transform_indices = @transform_3, window_bounds = array<i64: 128, 512>}, {pipeline_mode = #tpu.pipeline_mode<synchronous>, transform_indices = @transform_4, window_bounds = array<i64: 1, 512>}, {pipeline_mode = #tpu.pipeline_mode<synchronous>, transform_indices = @transform_5, window_bounds = array<i64: 512, 128>}, {pipeline_mode = #tpu.pipeline_mode<synchronous>, transform_indices = @transform_6, window_bounds = array<i64: 1, 128>}, {transform_indices = @transform_7, window_bounds = array<i64: 16, 128>}]} {
    %c0 = arith.constant 0 : index
    %c0_0 = arith.constant 0 : index
    %0 = vector.load %arg1[%c0, %c0_0] : memref<16x8xbf16, #tpu.memory_space<vmem>>, vector<16x8xbf16>
    %c0_1 = arith.constant 0 : index
    %c0_2 = arith.constant 0 : index
    %1 = vector.load %arg2[%c0_1, %c0_2] : memref<8x128xbf16, #tpu.memory_space<vmem>>, vector<8x128xbf16>
    %cst = arith.constant dense<0.000000e+00> : vector<16x128xf32>
    %2 = tpu.matmul %0, %1, %cst {dimension_numbers = #tpu.dot_dimension_numbers<[1], [0], [0], [1], [0, 0, 1, 1], [], []>} : vector<16x8xbf16>, vector<8x128xbf16>, vector<16x128xf32> -> vector<16x128xf32>
    %c0_3 = arith.constant 0 : index
    %c0_4 = arith.constant 0 : index
    %3 = vector.load %arg3[%c0_3, %c0_4] : memref<1x128xf32, #tpu.memory_space<vmem>>, vector<1x128xf32>
    %4 = vector.broadcast %3 : vector<1x128xf32> to vector<16x128xf32>
    %5 = arith.addf %2, %4 : vector<16x128xf32>
    %cst_5 = arith.constant 0.000000e+00 : f32
    %6 = vector.broadcast %cst_5 : f32 to vector<16x128xf32>
    %7 = arith.maximumf %5, %6 : vector<16x128xf32>
    %8 = arith.truncf %7 : vector<16x128xf32> to vector<16x128xbf16>
    %c0_6 = arith.constant 0 : index
    %c0_7 = arith.constant 0 : index
    %9 = vector.load %arg4[%c0_6, %c0_7] : memref<128x512xbf16, #tpu.memory_space<vmem>>, vector<128x512xbf16>
    %cst_8 = arith.constant dense<0.000000e+00> : vector<16x512xf32>
    %10 = tpu.matmul %8, %9, %cst_8 {dimension_numbers = #tpu.dot_dimension_numbers<[1], [0], [0], [1], [0, 0, 1, 1], [], []>} : vector<16x128xbf16>, vector<128x512xbf16>, vector<16x512xf32> -> vector<16x512xf32>
    %c0_9 = arith.constant 0 : index
    %c0_10 = arith.constant 0 : index
    %11 = vector.load %arg5[%c0_9, %c0_10] : memref<1x512xf32, #tpu.memory_space<vmem>>, vector<1x512xf32>
    %12 = vector.broadcast %11 : vector<1x512xf32> to vector<16x512xf32>
    %13 = arith.addf %10, %12 : vector<16x512xf32>
    %cst_11 = arith.constant 0.000000e+00 : f32
    %14 = vector.broadcast %cst_11 : f32 to vector<16x512xf32>
    %15 = arith.maximumf %13, %14 : vector<16x512xf32>
    %16 = arith.truncf %15 : vector<16x512xf32> to vector<16x512xbf16>
    %c0_12 = arith.constant 0 : index
    %c0_13 = arith.constant 0 : index
    %17 = vector.load %arg6[%c0_12, %c0_13] : memref<512x128xbf16, #tpu.memory_space<vmem>>, vector<512x128xbf16>
    %cst_14 = arith.constant dense<0.000000e+00> : vector<16x128xf32>
    %18 = tpu.matmul %16, %17, %cst_14 {dimension_numbers = #tpu.dot_dimension_numbers<[1], [0], [0], [1], [0, 0, 1, 1], [], []>} : vector<16x512xbf16>, vector<512x128xbf16>, vector<16x128xf32> -> vector<16x128xf32>
    %c0_15 = arith.constant 0 : index
    %c0_16 = arith.constant 0 : index
    %19 = vector.load %arg7[%c0_15, %c0_16] : memref<1x128xf32, #tpu.memory_space<vmem>>, vector<1x128xf32>
    %20 = vector.broadcast %19 : vector<1x128xf32> to vector<16x128xf32>
    %21 = arith.addf %18, %20 : vector<16x128xf32>
    %c0_17 = arith.constant 0 : index
    %c0_18 = arith.constant 0 : index
    %22 = vector.load %arg8[%c0_17, %c0_18] : memref<16x128xf32, #tpu.memory_space<vmem>>, vector<16x128xf32>
    tpu.vector_store %arg8[%c0_17, %c0_18], %21 {strides = array<i32>} : memref<16x128xf32, #tpu.memory_space<vmem>>, vector<16x128xf32>,
    return
  }
  func.func @transform_0(%arg0: i32) -> (i32, i32) {
    %c0_i32 = arith.constant 0 : i32
    %c0_i32_0 = arith.constant 0 : i32
    return %arg0, %c0_i32 : i32, i32
  }
  func.func @transform_1(%arg0: i32) -> (i32, i32) {
    %c0_i32 = arith.constant 0 : i32
    %c0_i32_0 = arith.constant 0 : i32
    %c0_i32_1 = arith.constant 0 : i32
    return %c0_i32, %c0_i32_0 : i32, i32
  }
  func.func @transform_2(%arg0: i32) -> (i32, i32) {
    %c0_i32 = arith.constant 0 : i32
    %c0_i32_0 = arith.constant 0 : i32
    %c0_i32_1 = arith.constant 0 : i32
    return %c0_i32, %c0_i32_0 : i32, i32
  }
  func.func @transform_3(%arg0: i32) -> (i32, i32) {
    %c0_i32 = arith.constant 0 : i32
    %c0_i32_0 = arith.constant 0 : i32
    %c0_i32_1 = arith.constant 0 : i32
    return %c0_i32, %c0_i32_0 : i32, i32
  }
  func.func @transform_4(%arg0: i32) -> (i32, i32) {
    %c0_i32 = arith.constant 0 : i32
    %c0_i32_0 = arith.constant 0 : i32
    %c0_i32_1 = arith.constant 0 : i32
    return %c0_i32, %c0_i32_0 : i32, i32
  }
  func.func @transform_5(%arg0: i32) -> (i32, i32) {
    %c0_i32 = arith.constant 0 : i32
    %c0_i32_0 = arith.constant 0 : i32
    %c0_i32_1 = arith.constant 0 : i32
    return %c0_i32, %c0_i32_0 : i32, i32
  }
  func.func @transform_6(%arg0: i32) -> (i32, i32) {
    %c0_i32 = arith.constant 0 : i32
    %c0_i32_0 = arith.constant 0 : i32
    %c0_i32_1 = arith.constant 0 : i32
    return %c0_i32, %c0_i32_0 : i32, i32
  }
  func.func @transform_7(%arg0: i32) -> (i32, i32) {
    %c0_i32 = arith.constant 0 : i32
    %c0_i32_0 = arith.constant 0 : i32
    return %arg0, %c0_i32 : i32, i32
  }
}

module attributes {stable_mosaic.version = 11 : i64} {
  func.func @dqn_kernel(%arg0: i32, %arg1: memref<16x8xbf16, #tpu.memory_space<vmem>>, %arg2: memref<8x128xbf16, #tpu.memory_space<vmem>>, %arg3: memref<1x128xf32, #tpu.memory_space<vmem>>, %arg4: memref<128x512xbf16, #tpu.memory_space<vmem>>, %arg5: memref<1x512xf32, #tpu.memory_space<vmem>>, %arg6: memref<512x128xbf16, #tpu.memory_space<vmem>>, %arg7: memref<1x128xf32, #tpu.memory_space<vmem>>, %arg8: memref<16x128xf32, #tpu.memory_space<vmem>>) attributes {dimension_semantics = [#tpu.dimension_semantics<parallel>], iteration_bounds = array<i64: 1>, scalar_prefetch = 0 : i64, scratch_operands = 0 : i64, tpu.core_type = #tpu.core_type<tc>, window_params = [{transform_indices = @transform_0, window_bounds = array<i64: 16, 8>}, {pipeline_mode = #tpu.pipeline_mode<synchronous>, transform_indices = @transform_1, window_bounds = array<i64: 8, 128>}, {pipeline_mode = #tpu.pipeline_mode<synchronous>, transform_indices = @transform_2, window_bounds = array<i64: 1, 128>}, {pipeline_mode = #tpu.pipeline_mode<synchronous>, transform_indices = @transform_3, window_bounds = array<i64: 128, 512>}, {pipeline_mode = #tpu.pipeline_mode<synchronous>, transform_indices = @transform_4, window_bounds = array<i64: 1, 512>}, {pipeline_mode = #tpu.pipeline_mode<synchronous>, transform_indices = @transform_5, window_bounds = array<i64: 512, 128>}, {pipeline_mode = #tpu.pipeline_mode<synchronous>, transform_indices = @transform_6, window_bounds = array<i64: 1, 128>}, {transform_indices = @transform_7, window_bounds = array<i64: 16, 128>}]} {
    %c0 = arith.constant 0 : index
    %c0_0 = arith.constant 0 : index
    %0 = vector.load %arg1[%c0, %c0_0] : memref<16x8xbf16, #tpu.memory_space<vmem>>, vector<16x8xbf16>
    %c0_1 = arith.constant 0 : index
    %c0_2 = arith.constant 0 : index
    %1 = vector.load %arg2[%c0_1, %c0_2] : memref<8x128xbf16, #tpu.memory_space<vmem>>, vector<8x128xbf16>
    %cst = arith.constant dense<0.000000e+00> : vector<16x128xf32>
    %2 = tpu.matmul %0, %1, %cst {dimension_numbers = #tpu.dot_dimension_numbers<[1], [0], [0], [1], [0, 0, 1, 1], [], []>} : vector<16x8xbf16>, vector<8x128xbf16>, vector<16x128xf32> -> vector<16x128xf32>
    %c0_3 = arith.constant 0 : index
    %c0_4 = arith.constant 0 : index
    %3 = vector.load %arg3[%c0_3, %c0_4] : memref<1x128xf32, #tpu.memory_space<vmem>>, vector<1x128xf32>
    %4 = vector.broadcast %3 : vector<1x128xf32> to vector<16x128xf32>
    %5 = arith.addf %2, %4 : vector<16x128xf32>
    %cst_5 = arith.constant 0.000000e+00 : f32
    %6 = vector.broadcast %cst_5 : f32 to vector<16x128xf32>
    %7 = arith.maximumf %5, %6 : vector<16x128xf32>
    %8 = arith.truncf %7 : vector<16x128xf32> to vector<16x128xbf16>
    %c0_6 = arith.constant 0 : index
    %c0_7 = arith.constant 0 : index
    %9 = vector.load %arg4[%c0_6, %c0_7] : memref<128x512xbf16, #tpu.memory_space<vmem>>, vector<128x512xbf16>
    %cst_8 = arith.constant dense<0.000000e+00> : vector<16x512xf32>
    %10 = tpu.matmul %8, %9, %cst_8 {dimension_numbers = #tpu.dot_dimension_numbers<[1], [0], [0], [1], [0, 0, 1, 1], [], []>} : vector<16x128xbf16>, vector<128x512xbf16>, vector<16x512xf32> -> vector<16x512xf32>
    %c0_9 = arith.constant 0 : index
    %c0_10 = arith.constant 0 : index
    %11 = vector.load %arg5[%c0_9, %c0_10] : memref<1x512xf32, #tpu.memory_space<vmem>>, vector<1x512xf32>
    %12 = vector.broadcast %11 : vector<1x512xf32> to vector<16x512xf32>
    %13 = arith.addf %10, %12 : vector<16x512xf32>
    %cst_11 = arith.constant 0.000000e+00 : f32
    %14 = vector.broadcast %cst_11 : f32 to vector<16x512xf32>
    %15 = arith.maximumf %13, %14 : vector<16x512xf32>
    %16 = arith.truncf %15 : vector<16x512xf32> to vector<16x512xbf16>
    %c0_12 = arith.constant 0 : index
    %c0_13 = arith.constant 0 : index
    %17 = vector.load %arg6[%c0_12, %c0_13] : memref<512x128xbf16, #tpu.memory_space<vmem>>, vector<512x128xbf16>
    %cst_14 = arith.constant dense<0.000000e+00> : vector<16x128xf32>
    %18 = tpu.matmul %16, %17, %cst_14 {dimension_numbers = #tpu.dot_dimension_numbers<[1], [0], [0], [1], [0, 0, 1, 1], [], []>} : vector<16x512xbf16>, vector<512x128xbf16>, vector<16x128xf32> -> vector<16x128xf32>
    %c0_15 = arith.constant 0 : index
    %c0_16 = arith.constant 0 : index
    %19 = vector.load %arg7[%c0_15, %c0_16] : memref<1x128xf32, #tpu.memory_space<vmem>>, vector<1x128xf32>
    %20 = vector.broadcast %19 : vector<1x128xf32> to vector<16x128xf32>
    %21 = arith.addf %18, %20 : vector<16x128xf32>
    %c0_17 = arith.constant 0 : index
    %c0_18 = arith.constant 0 : index
    %22 = vector.load %arg8[%c0_17, %c0_18] : memref<16x128xf32, #tpu.memory_space<vmem>>, vector<16x128xf32>
    tpu.vector_store %arg8[%c0_17, %c0_18], %21 {strides = array<i32>} : memref<16x128xf32, #tpu.memory_space<vmem>>, vector<16x128xf32>,
    return
  }
  func.func @transform_0(%arg0: i32) -> (i32, i32) {
    %c0_i32 = arith.constant 0 : i32
    %c0_i32_0 = arith.constant 0 : i32
    return %arg0, %c0_i32 : i32, i32
  }
  func.func @transform_1(%arg0: i32) -> (i32, i32) {
    %c0_i32 = arith.constant 0 : i32
    %c0_i32_0 = arith.constant 0 : i32
    %c0_i32_1 = arith.constant 0 : i32
    return %c0_i32, %c0_i32_0 : i32, i32
  }
  func.func @transform_2(%arg0: i32) -> (i32, i32) {
    %c0_i32 = arith.constant 0 : i32
    %c0_i32_0 = arith.constant 0 : i32
    %c0_i32_1 = arith.constant 0 : i32
    return %c0_i32, %c0_i32_0 : i32, i32
  }
  func.func @transform_3(%arg0: i32) -> (i32, i32) {
    %c0_i32 = arith.constant 0 : i32
    %c0_i32_0 = arith.constant 0 : i32
    %c0_i32_1 = arith.constant 0 : i32
    return %c0_i32, %c0_i32_0 : i32, i32
  }
  func.func @transform_4(%arg0: i32) -> (i32, i32) {
    %c0_i32 = arith.constant 0 : i32
    %c0_i32_0 = arith.constant 0 : i32
    %c0_i32_1 = arith.constant 0 : i32
    return %c0_i32, %c0_i32_0 : i32, i32
  }
  func.func @transform_5(%arg0: i32) -> (i32, i32) {
    %c0_i32 = arith.constant 0 : i32
    %c0_i32_0 = arith.constant 0 : i32
    %c0_i32_1 = arith.constant 0 : i32
    return %c0_i32, %c0_i32_0 : i32, i32
  }
  func.func @transform_6(%arg0: i32) -> (i32, i32) {
    %c0_i32 = arith.constant 0 : i32
    %c0_i32_0 = arith.constant 0 : i32
    %c0_i32_1 = arith.constant 0 : i32
    return %c0_i32, %c0_i32_0 : i32, i32
  }
  func.func @transform_7(%arg0: i32) -> (i32, i32) {
    %c0_i32 = arith.constant 0 : i32
    %c0_i32_0 = arith.constant 0 : i32
    return %arg0, %c0_i32 : i32, i32
  }
}

</mosaic_0001>

<bundles_post_ra>
// kernel: tpu_custom_call.1
= control target key start
LH: loop header
LB: loop body
LE: loop exit
PB: predicated region body
PF: predicated region fallthrough
CT: control target
= control target key end

     0   :  { %12 = vsyncpa [#allocation3], 0  ;;  %s1194_s0 = inlined_call_operand.vmem [shape: bf16[16,8], index: 0, kind: input, shape index: {}]   ;;  %s1195_s1 = inlined_call_operand.vmem [shape: bf16[8,128], index: 1, kind: input, shape index: {}]   ;;  %s1196_s2 = inlined_call_operand.vmem [shape: f32[1,128], index: 2, kind: input, shape index: {}]   ;;  %s1197_s3 = inlined_call_operand.hbm [shape: bf16[128,512], index: 3, kind: input, shape index: {}]   ;;  %s1198_s4 = inlined_call_operand.vmem [shape: f32[1,512], index: 4, kind: input, shape index: {}]   ;;  %s1199_s5 = inlined_call_operand.hbm [shape: bf16[512,128], index: 5, kind: input, shape index: {}]   ;;  %s1200_s6 = inlined_call_operand.vmem [shape: f32[1,128], index: 6, kind: input, shape index: {}]   ;;  %s1201_s7 = inlined_call_operand.hbm [shape: f32[16,128], index: 7, kind: output, shape index: {}]  }
   0x1   :  { %13 = vsyncpa [#allocation6], 0 }
   0x2   :  { %14 = vsyncpa [#allocation4], 0  ;;  %s25_s26 = sshll.u32 %s1197_s3, 4  ;;  %s1120_s27 = smov [#allocation2]   ;;  %s26_s26 = int_to_ptr.hbm [resolvable:$true] %s25_s26 }
   0x3   :  { %s27_s28 = sshll.u32 %s1120_s27, 4  ;;  %s40_s8 = sshll.u32 %s1199_s5, 4  ;;  %s28_s28 = int_to_ptr.vmem [resolvable:$true] %s27_s28  ;;  %s41_s8 = int_to_ptr.hbm [resolvable:$true] %s40_s8 }
   0x4   :  { %s1121_s9 = smov 256   ;;  %s1122_s10 = smov 16  }
   0x5   :  { %33 = dma.hbm_to_vmem [thread:$0]  %s26_s26, 4096, %s28_s28, [#allocation3], %s1121_s9, %s1121_s9, %s1122_s10  }
   0x6   :  { %s1123_s11 = smov [#allocation5]   ;;  %s1124_s13 = smov 64  }
   0x7   :  { %s42_s12 = sshll.u32 %s1123_s11, 4  ;;  %s1125_s14 = smov 4   ;;  %s43_s12 = int_to_ptr.vmem [resolvable:$true] %s42_s12 }
   0x8   :  { %48 = dma.hbm_to_vmem [thread:$0]  %s41_s8, 4096, %s43_s12, [#allocation6], %s1124_s13, %s1124_s13, %s1125_s14  }
   0x9   :  { %1114 = dma.done.wait [#allocation3], 4096  }
   0xa   :  { %1115 = vsyncadd [#allocation3], 4294963200 }
   0xb   :  { %1116 = dma.done.wait [#allocation6], 4096  }
   0xc   :  { %1117 = vsyncadd [#allocation6], 4294963200  ;;  %vm76_vm0 = vcmask 1043456   ;;  %v62_v0 = vld [vmem:[%s1195_s1] sm:$0xf]  ;;  %vm72_vm1 = vcmask 64512  }
   0xd   :  { %v824_v1 = vld [vmem:[#allocation2 + $0xe0] sm:$0xf]  ;;  %v78_v2 = vsel %vm76_vm0, %v62_v0, 0  ;;  %v997_v4 = vld [vmem:[#allocation2 + $0xec] sm:$0xf0]  ;;  %s1126_s19 = smov [#allocation7]  }
   0xe   :  { %v966_v3 = vld [vmem:[%s1194_s0] sm:$0xff]  ;;  %87 = vmatpush.bf16.msra.mxu0 %v78_v2  ;;  %v825_v6 = vor.u32 %v997_v4, %v824_v1  ;;  %v826_v7 = vld [vmem:[#allocation2 + $0xf0] sm:$0xf0]  ;;  %v832_v8 = vld [vmem:[#allocation2 + $0xe8] sm:$0xf]  ;;  %s689_s20 = sshll.u32 %s1126_s19, 4  ;;  %s690_s20 = int_to_ptr.vmem [resolvable:$true] %s689_s20 }
   0xf   :  { %v995_v5 = vld [vmem:[#allocation2 + $0xe4] sm:$0xf]  ;;  %v998_v9 = vld [vmem:[#allocation2 + $0xf4] sm:$0xf0]  ;;  %v996_v12 = vld [vmem:[#allocation2 + $0xec] sm:$0xf] }
  0x10   :  { %v829_v10 = vor.u32 %v995_v5, %v826_v7  ;;  %v833_v11 = vor.u32 %v998_v9, %v832_v8  ;;  %v834_v13 = vld [vmem:[#allocation2 + $0xf8] sm:$0xf0]  ;;  %v808_v14 = vld [vmem:[#allocation2 + $0xc0] sm:$0xf]  ;;  %299 = vmatpush.bf16.msra.mxu1 %v825_v6  ;;  %v993_v16 = vld [vmem:[#allocation2 + $0xcc] sm:$0xf0] }
  0x11   :  { %v837_v15 = vor.u32 %v996_v12, %v834_v13  ;;  %v991_v17 = vld [vmem:[#allocation2 + $0xc4] sm:$0xf]  ;;  %v810_v18 = vld [vmem:[#allocation2 + $0xd0] sm:$0xf0]  ;;  %709 = vmatmul.msk.bf16.vlgmr.msra.gmra.mxu0 %vm72_vm1, %v966_v3  ;;  %v809_v19 = vor.u32 %v993_v16, %v808_v14  ;;  %v816_v21 = vld [vmem:[#allocation2 + $0xc8] sm:$0xf] }
  0x12   :  { %313 = vmatpush.bf16.msra.mxu2 %v829_v10  ;;  %v813_v20 = vor.u32 %v991_v17, %v810_v18  ;;  %v994_v22 = vld [vmem:[#allocation2 + $0xd4] sm:$0xf0]  ;;  %v992_v23 = vld [vmem:[#allocation2 + $0xcc] sm:$0xf]  ;;  %327 = vmatpush.bf16.msra.mxu3 %v833_v11  ;;  %v818_v25 = vld [vmem:[#allocation2 + $0xd8] sm:$0xf0] }
  0x13   :  { %341 = vmatpush.bf16.msrb.mxu0 %v837_v15  ;;  %v817_v24 = vor.u32 %v994_v22, %v816_v21  ;;  %v792_v26 = vld [vmem:[#allocation2 + $0xa0] sm:$0xf]  ;;  %v989_v27 = vld [vmem:[#allocation2 + $0xac] sm:$0xf0]  ;;  %v821_v28 = vor.u32 %v992_v23, %v818_v25  ;;  %v987_v29 = vld [vmem:[#allocation2 + $0xa4] sm:$0xf] }
  0x14   :  { %v794_v30 = vld [vmem:[#allocation2 + $0xb0] sm:$0xf0]  ;;  %v800_v31 = vld [vmem:[#allocation2 + $0xa8] sm:$0xf]  ;;  %300 = vmatpush.bf16.msra.mxu1 %v809_v19  ;;  %v793_v32 = vor.u32 %v989_v27, %v792_v26  ;;  %v990_v33 = vld [vmem:[#allocation2 + $0xb4] sm:$0xf0] }
  0x15   :  { %v988_v34 = vld [vmem:[#allocation2 + $0xac] sm:$0xf]  ;;  %v802_v35 = vld [vmem:[#allocation2 + $0xb8] sm:$0xf0]  ;;  %v797_v36 = vor.u32 %v987_v29, %v794_v30  ;;  %v776_v37 = vld [vmem:[#allocation2 + $0x80] sm:$0xf]  ;;  %v801_v40 = vor.u32 %v990_v33, %v800_v31 }
  0x16   :  { %314 = vmatpush.bf16.msra.mxu2 %v813_v20  ;;  %v985_v38 = vld [vmem:[#allocation2 + $0x8c] sm:$0xf0]  ;;  %v983_v39 = vld [vmem:[#allocation2 + $0x84] sm:$0xf]  ;;  %328 = vmatpush.bf16.msra.mxu3 %v817_v24  ;;  %v805_v41 = vor.u32 %v988_v34, %v802_v35  ;;  %v778_v42 = vld [vmem:[#allocation2 + $0x90] sm:$0xf0] }
  0x17   :  { %342 = vmatpush.bf16.msrb.mxu0 %v821_v28  ;;  %v784_v43 = vld [vmem:[#allocation2 + $0x88] sm:$0xf]  ;;  %v986_v44 = vld [vmem:[#allocation2 + $0x94] sm:$0xf0]  ;;  %v984_v45 = vld [vmem:[#allocation2 + $0x8c] sm:$0xf]  ;;  %v777_v47 = vor.u32 %v985_v38, %v776_v37  ;;  %v781_v48 = vor.u32 %v983_v39, %v778_v42 }
  0x18   :  { %v786_v46 = vld [vmem:[#allocation2 + $0x98] sm:$0xf0]  ;;  %301 = vmatpush.bf16.msra.mxu1 %v793_v32  ;;  %v785_v49 = vor.u32 %v986_v44, %v784_v43  ;;  %v760_v51 = vld [vmem:[#allocation2 + $0x60] sm:$0xf]  ;;  %v981_v52 = vld [vmem:[#allocation2 + $0x6c] sm:$0xf0] }
  0x19   :  { %v789_v50 = vor.u32 %v984_v45, %v786_v46  ;;  %v979_v53 = vld [vmem:[#allocation2 + $0x64] sm:$0xf]  ;;  %v761_v54 = vor.u32 %v981_v52, %v760_v51  ;;  %v762_v55 = vld [vmem:[#allocation2 + $0x70] sm:$0xf0]  ;;  %v768_v56 = vld [vmem:[#allocation2 + $0x68] sm:$0xf] }
  0x1a   :  { %315 = vmatpush.bf16.msra.mxu2 %v797_v36  ;;  %329 = vmatpush.bf16.msra.mxu3 %v801_v40  ;;  %v982_v57 = vld [vmem:[#allocation2 + $0x74] sm:$0xf0]  ;;  %v765_v58 = vor.u32 %v979_v53, %v762_v55  ;;  %v980_v60 = vld [vmem:[#allocation2 + $0x6c] sm:$0xf]  ;;  %v770_v61 = vld [vmem:[#allocation2 + $0x78] sm:$0xf0] }
  0x1b   :  { %343 = vmatpush.bf16.msrb.mxu0 %v805_v41  ;;  %v769_v59 = vor.u32 %v982_v57, %v768_v56  ;;  %v773_v62 = vor.u32 %v980_v60, %v770_v61  ;;  %v744_v63 = vld [vmem:[#allocation2 + $0x40] sm:$0xf]  ;;  %v977_v0 = vld [vmem:[#allocation2 + $0x4c] sm:$0xf0]  ;;  %v975_v1 = vld [vmem:[#allocation2 + $0x44] sm:$0xf] }
  0x1c   :  { %302 = vmatpush.bf16.msra.mxu1 %v777_v47  ;;  %v745_v2 = vor.u32 %v977_v0, %v744_v63  ;;  %v746_v3 = vld [vmem:[#allocation2 + $0x50] sm:$0xf0]  ;;  %v752_v4 = vld [vmem:[#allocation2 + $0x48] sm:$0xf]  ;;  %v978_v5 = vld [vmem:[#allocation2 + $0x54] sm:$0xf0] }
  0x1d   :  { %v749_v6 = vor.u32 %v975_v1, %v746_v3  ;;  %v753_v7 = vor.u32 %v978_v5, %v752_v4  ;;  %v976_v8 = vld [vmem:[#allocation2 + $0x4c] sm:$0xf]  ;;  %v754_v9 = vld [vmem:[#allocation2 + $0x58] sm:$0xf0]  ;;  %v728_v11 = vld [vmem:[#allocation2 + $0x20] sm:$0xf] }
  0x1e   :  { %316 = vmatpush.bf16.msra.mxu2 %v781_v48  ;;  %330 = vmatpush.bf16.msra.mxu3 %v785_v49  ;;  %v757_v10 = vor.u32 %v976_v8, %v754_v9  ;;  %v973_v12 = vld [vmem:[#allocation2 + $0x2c] sm:$0xf0]  ;;  %v971_v13 = vld [vmem:[#allocation2 + $0x24] sm:$0xf]  ;;  %v730_v15 = vld [vmem:[#allocation2 + $0x30] sm:$0xf0] }
  0x1f   :  { %344 = vmatpush.bf16.msrb.mxu0 %v789_v50  ;;  %v729_v14 = vor.u32 %v973_v12, %v728_v11  ;;  %v736_v16 = vld [vmem:[#allocation2 + $0x28] sm:$0xf]  ;;  %v974_v17 = vld [vmem:[#allocation2 + $0x34] sm:$0xf0]  ;;  %v733_v18 = vor.u32 %v971_v13, %v730_v15  ;;  %v972_v20 = vld [vmem:[#allocation2 + $0x2c] sm:$0xf] }
  0x20   :  { %303 = vmatpush.bf16.msra.mxu1 %v761_v54  ;;  %v737_v19 = vor.u32 %v974_v17, %v736_v16  ;;  %v738_v21 = vld [vmem:[#allocation2 + $0x38] sm:$0xf0]  ;;  %v712_v23 = vld [vmem:[#allocation2] sm:$0xf]  ;;  %v969_v24 = vld [vmem:[#allocation2 + $0xc] sm:$0xf0] }
  0x21   :  { %v741_v22 = vor.u32 %v972_v20, %v738_v21  ;;  %v967_v25 = vld [vmem:[#allocation2 + $0x4] sm:$0xf]  ;;  %v713_v26 = vor.u32 %v969_v24, %v712_v23  ;;  %v714_v27 = vld [vmem:[#allocation2 + $0x10] sm:$0xf0]  ;;  %v720_v28 = vld [vmem:[#allocation2 + $0x8] sm:$0xf] }
  0x22   :  { %317 = vmatpush.bf16.msra.mxu2 %v765_v58  ;;  %331 = vmatpush.bf16.msra.mxu3 %v769_v59  ;;  %v970_v29 = vld [vmem:[#allocation2 + $0x14] sm:$0xf0]  ;;  %v717_v30 = vor.u32 %v967_v25, %v714_v27  ;;  %v968_v32 = vld [vmem:[#allocation2 + $0xc] sm:$0xf]  ;;  %v722_v33 = vld [vmem:[#allocation2 + $0x18] sm:$0xf0] }
  0x23   :  { %345 = vmatpush.bf16.msrb.mxu0 %v773_v62  ;;  %v721_v31 = vor.u32 %v970_v29, %v720_v28  ;;  %v725_v34 = vor.u32 %v968_v32, %v722_v33  ;;  %v1006_v35 = vld [vmem:[#allocation5 + $0x38] sm:$0xff]  ;;  %v1005_v39 = vld [vmem:[#allocation5 + $0x30] sm:$0xff]  ;;  %v1004_v43 = vld [vmem:[#allocation5 + $0x28] sm:$0xff]  ;;  %s691_s23 = sshll.u32 %s1201_s7, 4  ;;  %s1128_s24 = smov 8   ;;  %s692_s23 = int_to_ptr.hbm [resolvable:$true] %s691_s23 }
  0x24   :  { %304 = vmatpush.bf16.msra.mxu1 %v745_v2  ;;  %v1030_v36 = vld [vmem:[#allocation5 + $0xf8] sm:$0xff]  ;;  %v1029_v40 = vld [vmem:[#allocation5 + $0xf0] sm:$0xff]  ;;  %v1028_v44 = vld [vmem:[#allocation5 + $0xe8] sm:$0xff] }
  0x25   :  { %v1014_v37 = vld [vmem:[#allocation5 + $0x78] sm:$0xff]  ;;  %v1013_v41 = vld [vmem:[#allocation5 + $0x70] sm:$0xff]  ;;  %v1012_v45 = vld [vmem:[#allocation5 + $0x68] sm:$0xff] }
  0x26   :  { %318 = vmatpush.bf16.msra.mxu2 %v749_v6  ;;  %332 = vmatpush.bf16.msra.mxu3 %v753_v7  ;;  %v1022_v38 = vld [vmem:[#allocation5 + $0xb8] sm:$0xff]  ;;  %v1021_v42 = vld [vmem:[#allocation5 + $0xb0] sm:$0xff]  ;;  %v1020_v46 = vld [vmem:[#allocation5 + $0xa8] sm:$0xff] }
  0x27   :  { %346 = vmatpush.bf16.msrb.mxu0 %v757_v10  ;;  %v1003_v47 = vld [vmem:[#allocation5 + $0x20] sm:$0xff]  ;;  %v1002_v57 = vld [vmem:[#allocation5 + $0x18] sm:$0xff]  ;;  %v1001_v61 = vld [vmem:[#allocation5 + $0x10] sm:$0xff] }
  0x28   :  { %305 = vmatpush.bf16.msra.mxu1 %v729_v14  ;;  %v1027_v48 = vld [vmem:[#allocation5 + $0xe0] sm:$0xff]  ;;  %v1026_v58 = vld [vmem:[#allocation5 + $0xd8] sm:$0xff]  ;;  %v1025_v62 = vld [vmem:[#allocation5 + $0xd0] sm:$0xff] }
  0x29   :  { %v1040_v50 = vld [vmem:[%s1196_s2] ss:$0 sm:$0xff]  ;;  %v1010_v63 = vld [vmem:[#allocation5 + $0x58] sm:$0xff]  ;;  %v1000_v1 = vld [vmem:[#allocation5 + $0x8] sm:$0xff] }
  0x2a   :  { %319 = vmatpush.bf16.msra.mxu2 %v733_v18  ;;  %333 = vmatpush.bf16.msra.mxu3 %v737_v19  ;;  %v1011_v59 = vld [vmem:[#allocation5 + $0x60] sm:$0xff]  ;;  %v1018_v0 = vld [vmem:[#allocation5 + $0x98] sm:$0xff]  ;;  %v1024_v2 = vld [vmem:[#allocation5 + $0xc8] sm:$0xff] }
  0x2b   :  { %347 = vmatpush.bf16.msrb.mxu0 %v741_v22  ;;  %v1019_v60 = vld [vmem:[#allocation5 + $0xa0] sm:$0xff]  ;;  %v1009_v3 = vld [vmem:[#allocation5 + $0x50] sm:$0xff]  ;;  %v1008_v7 = vld [vmem:[#allocation5 + $0x48] sm:$0xff] }
  0x2c   :  { %306 = vmatpush.bf16.msra.mxu1 %v713_v26  ;;  %v1017_v4 = vld [vmem:[#allocation5 + $0x90] sm:$0xff]  ;;  %v999_v5 = vld [vmem:[#allocation5] sm:$0xff]  ;;  %v1016_v8 = vld [vmem:[#allocation5 + $0x88] sm:$0xff] }
  0x2d   :  { %v1023_v6 = vld [vmem:[#allocation5 + $0xc0] sm:$0xff] }
  0x2e   :  { %320 = vmatpush.bf16.msra.mxu2 %v717_v30  ;;  %334 = vmatpush.bf16.msra.mxu3 %v721_v31  ;;  %v1007_v9 = vld [vmem:[#allocation5 + $0x40] sm:$0xff] }
  0x2f   :  { %348 = vmatpush.bf16.msrb.mxu0 %v725_v34  ;;  %v1015_v10 = vld [vmem:[#allocation5 + $0x80] sm:$0xff] }
  0x30   :  { %627 = vmatpush.bf16.msrb.mxu1 %v1006_v35  ;;  %v129_v11 = vld [vmem:[%s1198_s4] sm:$0xf] }
  0x31   :  { %v131_v14 = vperm.slane %v129_v11, 0  ;;  %v134_v15 = vperm.slane %v129_v11, 3  ;;  %v132_v21 = vperm.slane %v129_v11, 1  ;;  %v133_v24 = vperm.slane %v129_v11, 2 }
  0x32   :  { %641 = vmatpush.bf16.msrb.mxu2 %v1014_v37  ;;  %655 = vmatpush.bf16.msrb.mxu3 %v1022_v38 }
  0x33   :  { %669 = vmatpush.bf16.msra.mxu0 %v1030_v36 }
  0x34   :  { %628 = vmatpush.bf16.msrb.mxu1 %v1005_v39 }
  0x36   :  { %642 = vmatpush.bf16.msrb.mxu2 %v1013_v41  ;;  %656 = vmatpush.bf16.msrb.mxu3 %v1021_v42 }
  0x37   :  { %670 = vmatpush.bf16.msra.mxu0 %v1029_v40 }
  0x38   :  { %629 = vmatpush.bf16.msrb.mxu1 %v1004_v43 }
  0x3a   :  { %643 = vmatpush.bf16.msrb.mxu2 %v1012_v45  ;;  %657 = vmatpush.bf16.msrb.mxu3 %v1020_v46  ;;  %v1041_v45 = vld [vmem:[%s1200_s6] ss:$0 sm:$0xff]  ;;  %s1127_s6 = smov 128  }
  0x3b   :  { %671 = vmatpush.bf16.msra.mxu0 %v1028_v44 }
  0x3c   :  { %630 = vmatpush.bf16.msrb.mxu1 %v1003_v47 }
  0x3e   :  { %644 = vmatpush.bf16.msrb.mxu2 %v1011_v59  ;;  %658 = vmatpush.bf16.msrb.mxu3 %v1019_v60 }
  0x3f   :  { %672 = vmatpush.bf16.msra.mxu0 %v1027_v48 }
  0x40   :  { %631 = vmatpush.bf16.msrb.mxu1 %v1002_v57 }
  0x42   :  { %645 = vmatpush.bf16.msrb.mxu2 %v1010_v63  ;;  %659 = vmatpush.bf16.msrb.mxu3 %v1018_v0 }
  0x43   :  { %673 = vmatpush.bf16.msra.mxu0 %v1026_v58 }
  0x44   :  { %632 = vmatpush.bf16.msrb.mxu1 %v1001_v61 }
  0x46   :  { %646 = vmatpush.bf16.msrb.mxu2 %v1009_v3  ;;  %660 = vmatpush.bf16.msrb.mxu3 %v1017_v4 }
  0x47   :  { %674 = vmatpush.bf16.msra.mxu0 %v1025_v62 }
  0x48   :  { %633 = vmatpush.bf16.msrb.mxu1 %v1000_v1 }
  0x4a   :  { %647 = vmatpush.bf16.msrb.mxu2 %v1008_v7  ;;  %661 = vmatpush.bf16.msrb.mxu3 %v1016_v8 }
  0x4b   :  { %675 = vmatpush.bf16.msra.mxu0 %v1024_v2 }
  0x4c   :  { %634 = vmatpush.bf16.msrb.mxu1 %v999_v5 }
  0x4e   :  { %648 = vmatpush.bf16.msrb.mxu2 %v1007_v9  ;;  %662 = vmatpush.bf16.msrb.mxu3 %v1015_v10 }
  0x4f   :  { %676 = vmatpush.bf16.msra.mxu0 %v1023_v6 }
  0x8e   :  { %v89_v49 = vpop.f32.mrf.mxu0 }
  0x8f   :  { %v90_v51 = vadd.f32 %v1040_v50, %v89_v49 }
  0x91   :  { %v94_v54 = vmax.f32 %v90_v51, 0.0 }
  0x96   :  { %v91_v52 = vpop.f32.mrf.mxu0 }
  0x97   :  { %v92_v53 = vadd.f32 %v1040_v50, %v91_v52 }
  0x99   :  { %v95_v55 = vmax.f32 %v92_v53, 0.0 }
  0x9b   :  { %v96_v56 = vpack.c.bf16 %v95_v55, %v94_v54 }
  0x9d   :  { %307 = vmatmul.bf16.vlgmr.msra.gmra.mxu1 %v96_v56  ;;  %321 = vmatmul.bf16.vlgmr.msra.gmra.mxu2 %v96_v56 }
  0x9e   :  { %335 = vmatmul.bf16.vlgmr.msra.gmra.mxu3 %v96_v56  ;;  %349 = vmatmul.bf16.vlgmr.msrb.gmra.mxu0 %v96_v56 }
 0x11a   :  { %v308_v12 = vpop.f32.mrf.mxu1 }
 0x11b   :  { %v350_v13 = vpop.f32.mrf.mxu0  ;;  %v309_v17 = vadd.f32 %v308_v12, %v131_v14 }
 0x11c   :  { %v351_v19 = vadd.f32 %v350_v13, %v134_v15 }
 0x11d   :  { %v355_v26 = vmax.f32 %v309_v17, 0.0 }
 0x11e   :  { %v358_v28 = vmax.f32 %v351_v19, 0.0 }
 0x120   :  { %v322_v16 = vpop.f32.mrf.mxu2 }
 0x121   :  { %v336_v18 = vpop.f32.mrf.mxu3  ;;  %v323_v30 = vadd.f32 %v322_v16, %v132_v21 }
 0x122   :  { %v310_v20 = vpop.f32.mrf.mxu1  ;;  %v337_v32 = vadd.f32 %v336_v18, %v133_v24 }
 0x123   :  { %v311_v22 = vadd.f32 %v310_v20, %v131_v14  ;;  %v352_v23 = vpop.f32.mrf.mxu0  ;;  %v356_v38 = vmax.f32 %v323_v30, 0.0 }
 0x124   :  { %v353_v25 = vadd.f32 %v352_v23, %v134_v15  ;;  %v357_v40 = vmax.f32 %v337_v32, 0.0 }
 0x125   :  { %v359_v27 = vmax.f32 %v311_v22, 0.0 }
 0x126   :  { %v362_v29 = vmax.f32 %v353_v25, 0.0 }
 0x127   :  { %v363_v31 = vpack.c.bf16 %v359_v27, %v355_v26 }
 0x128   :  { %v366_v33 = vpack.c.bf16 %v362_v29, %v358_v28  ;;  %v324_v34 = vpop.f32.mrf.mxu2 }
 0x129   :  { %v325_v35 = vadd.f32 %v324_v34, %v132_v21  ;;  %v338_v36 = vpop.f32.mrf.mxu3  ;;  %635 = vmatmul.bf16.vlgmr.msrb.gmra.mxu1 %v363_v31 }
 0x12a   :  { %v339_v37 = vadd.f32 %v338_v36, %v133_v24  ;;  %677 = vmatmul.bf16.vlgmr.msra.gmra.mxu0 %v366_v33 }
 0x12b   :  { %v360_v39 = vmax.f32 %v325_v35, 0.0 }
 0x12c   :  { %v361_v41 = vmax.f32 %v339_v37, 0.0 }
 0x12d   :  { %v364_v42 = vpack.c.bf16 %v360_v39, %v356_v38 }
 0x12e   :  { %v365_v43 = vpack.c.bf16 %v361_v41, %v357_v40 }
 0x12f   :  { %649 = vmatmul.bf16.vlgmr.msrb.gmra.mxu2 %v364_v42 }
 0x130   :  { %663 = vmatmul.bf16.vlgmr.msrb.gmra.mxu3 %v365_v43 }
 0x1a6   :  { %v636_v44 = vpop.f32.mrf.mxu1 }
 0x1a7   :  { %v637_v46 = vadd.f32 %v1041_v45, %v636_v44  ;;  %v678_v50 = vpop.f32.mrf.mxu0 }
 0x1ae   :  { %v638_v52 = vpop.f32.mrf.mxu1 }
 0x1af   :  { %v639_v54 = vadd.f32 %v1041_v45, %v638_v52  ;;  %v680_v59 = vpop.f32.mrf.mxu0 }
 0x1b2   :  { %v650_v47 = vpop.f32.mrf.mxu2 }
 0x1b3   :  { %v651_v48 = vadd.f32 %v650_v47, %v637_v46  ;;  %v664_v49 = vpop.f32.mrf.mxu3 }
 0x1b5   :  { %v665_v51 = vadd.f32 %v664_v49, %v651_v48 }
 0x1b7   :  { %v679_v53 = vadd.f32 %v678_v50, %v665_v51 }
 0x1b9   :  { %683 = vst [vmem:[#allocation7] sm:$0xff] %v679_v53 }
 0x1ba   :  { %v652_v55 = vpop.f32.mrf.mxu2 }
 0x1bb   :  { %v653_v56 = vadd.f32 %v652_v55, %v639_v54  ;;  %v666_v57 = vpop.f32.mrf.mxu3 }
 0x1bd   :  { %v667_v58 = vadd.f32 %v666_v57, %v653_v56 }
 0x1bf   :  { %v681_v60 = vadd.f32 %v680_v59, %v667_v58 }
 0x1c1   :  { %684 = vst [vmem:[#allocation7 + $0x8] sm:$0xff] %v681_v60 }
 0x1c2   :  { %697 = dma.vmem_to_hbm [thread:$0]  %s690_s20, 256, %s692_s23, [#allocation4], %s1127_s6, %s1127_s6, %s1128_s24  }
 0x1c3   :  { %1118 = dma.done.wait [#allocation4], 256  }
 0x1c4   :  { %1119 = vsyncadd [#allocation4], 4294967040 }
 0x1c5   :  { %702 = vsyncpa [#allocation3], 1 }
 0x1c6   :  { %703 = vsyncpa [#allocation6], 1 }
 0x1c7   :  { %704 = vsyncpa [#allocation4], 1 }

// kernel: tpu_custom_call.1
= control target key start
LH: loop header
LB: loop body
LE: loop exit
PB: predicated region body
PF: predicated region fallthrough
CT: control target
= control target key end

     0   :  { %12 = vsyncpa [#allocation3], 0  ;;  %s1194_s0 = inlined_call_operand.vmem [shape: bf16[16,8], index: 0, kind: input, shape index: {}]   ;;  %s1195_s1 = inlined_call_operand.vmem [shape: bf16[8,128], index: 1, kind: input, shape index: {}]   ;;  %s1196_s2 = inlined_call_operand.vmem [shape: f32[1,128], index: 2, kind: input, shape index: {}]   ;;  %s1197_s3 = inlined_call_operand.hbm [shape: bf16[128,512], index: 3, kind: input, shape index: {}]   ;;  %s1198_s4 = inlined_call_operand.vmem [shape: f32[1,512], index: 4, kind: input, shape index: {}]   ;;  %s1199_s5 = inlined_call_operand.hbm [shape: bf16[512,128], index: 5, kind: input, shape index: {}]   ;;  %s1200_s6 = inlined_call_operand.vmem [shape: f32[1,128], index: 6, kind: input, shape index: {}]   ;;  %s1201_s7 = inlined_call_operand.hbm [shape: f32[16,128], index: 7, kind: output, shape index: {}]  }
   0x1   :  { %13 = vsyncpa [#allocation6], 0 }
   0x2   :  { %14 = vsyncpa [#allocation4], 0  ;;  %s25_s26 = sshll.u32 %s1197_s3, 4  ;;  %s1120_s27 = smov [#allocation2]   ;;  %s26_s26 = int_to_ptr.hbm [resolvable:$true] %s25_s26 }
   0x3   :  { %s27_s28 = sshll.u32 %s1120_s27, 4  ;;  %s40_s8 = sshll.u32 %s1199_s5, 4  ;;  %s28_s28 = int_to_ptr.vmem [resolvable:$true] %s27_s28  ;;  %s41_s8 = int_to_ptr.hbm [resolvable:$true] %s40_s8 }
   0x4   :  { %s1121_s9 = smov 256   ;;  %s1122_s10 = smov 16  }
   0x5   :  { %33 = dma.hbm_to_vmem [thread:$0]  %s26_s26, 4096, %s28_s28, [#allocation3], %s1121_s9, %s1121_s9, %s1122_s10  }
   0x6   :  { %s1123_s11 = smov [#allocation5]   ;;  %s1124_s13 = smov 64  }
   0x7   :  { %s42_s12 = sshll.u32 %s1123_s11, 4  ;;  %s1125_s14 = smov 4   ;;  %s43_s12 = int_to_ptr.vmem [resolvable:$true] %s42_s12 }
   0x8   :  { %48 = dma.hbm_to_vmem [thread:$0]  %s41_s8, 4096, %s43_s12, [#allocation6], %s1124_s13, %s1124_s13, %s1125_s14  }
   0x9   :  { %1114 = dma.done.wait [#allocation3], 4096  }
   0xa   :  { %1115 = vsyncadd [#allocation3], 4294963200 }
   0xb   :  { %1116 = dma.done.wait [#allocation6], 4096  }
   0xc   :  { %1117 = vsyncadd [#allocation6], 4294963200  ;;  %vm76_vm0 = vcmask 1043456   ;;  %v62_v0 = vld [vmem:[%s1195_s1] sm:$0xf]  ;;  %vm72_vm1 = vcmask 64512  }
   0xd   :  { %v824_v1 = vld [vmem:[#allocation2 + $0xe0] sm:$0xf]  ;;  %v78_v2 = vsel %vm76_vm0, %v62_v0, 0  ;;  %v997_v4 = vld [vmem:[#allocation2 + $0xec] sm:$0xf0]  ;;  %s1126_s19 = smov [#allocation7]  }
   0xe   :  { %v966_v3 = vld [vmem:[%s1194_s0] sm:$0xff]  ;;  %87 = vmatpush.bf16.msra.mxu0 %v78_v2  ;;  %v825_v6 = vor.u32 %v997_v4, %v824_v1  ;;  %v826_v7 = vld [vmem:[#allocation2 + $0xf0] sm:$0xf0]  ;;  %v832_v8 = vld [vmem:[#allocation2 + $0xe8] sm:$0xf]  ;;  %s689_s20 = sshll.u32 %s1126_s19, 4  ;;  %s690_s20 = int_to_ptr.vmem [resolvable:$true] %s689_s20 }
   0xf   :  { %v995_v5 = vld [vmem:[#allocation2 + $0xe4] sm:$0xf]  ;;  %v998_v9 = vld [vmem:[#allocation2 + $0xf4] sm:$0xf0]  ;;  %v996_v12 = vld [vmem:[#allocation2 + $0xec] sm:$0xf] }
  0x10   :  { %v829_v10 = vor.u32 %v995_v5, %v826_v7  ;;  %v833_v11 = vor.u32 %v998_v9, %v832_v8  ;;  %v834_v13 = vld [vmem:[#allocation2 + $0xf8] sm:$0xf0]  ;;  %v808_v14 = vld [vmem:[#allocation2 + $0xc0] sm:$0xf]  ;;  %299 = vmatpush.bf16.msra.mxu1 %v825_v6  ;;  %v993_v16 = vld [vmem:[#allocation2 + $0xcc] sm:$0xf0] }
  0x11   :  { %v837_v15 = vor.u32 %v996_v12, %v834_v13  ;;  %v991_v17 = vld [vmem:[#allocation2 + $0xc4] sm:$0xf]  ;;  %v810_v18 = vld [vmem:[#allocation2 + $0xd0] sm:$0xf0]  ;;  %709 = vmatmul.msk.bf16.vlgmr.msra.gmra.mxu0 %vm72_vm1, %v966_v3  ;;  %v809_v19 = vor.u32 %v993_v16, %v808_v14  ;;  %v816_v21 = vld [vmem:[#allocation2 + $0xc8] sm:$0xf] }
  0x12   :  { %313 = vmatpush.bf16.msra.mxu2 %v829_v10  ;;  %v813_v20 = vor.u32 %v991_v17, %v810_v18  ;;  %v994_v22 = vld [vmem:[#allocation2 + $0xd4] sm:$0xf0]  ;;  %v992_v23 = vld [vmem:[#allocation2 + $0xcc] sm:$0xf]  ;;  %327 = vmatpush.bf16.msra.mxu3 %v833_v11  ;;  %v818_v25 = vld [vmem:[#allocation2 + $0xd8] sm:$0xf0] }
  0x13   :  { %341 = vmatpush.bf16.msrb.mxu0 %v837_v15  ;;  %v817_v24 = vor.u32 %v994_v22, %v816_v21  ;;  %v792_v26 = vld [vmem:[#allocation2 + $0xa0] sm:$0xf]  ;;  %v989_v27 = vld [vmem:[#allocation2 + $0xac] sm:$0xf0]  ;;  %v821_v28 = vor.u32 %v992_v23, %v818_v25  ;;  %v987_v29 = vld [vmem:[#allocation2 + $0xa4] sm:$0xf] }
  0x14   :  { %v794_v30 = vld [vmem:[#allocation2 + $0xb0] sm:$0xf0]  ;;  %v800_v31 = vld [vmem:[#allocation2 + $0xa8] sm:$0xf]  ;;  %300 = vmatpush.bf16.msra.mxu1 %v809_v19  ;;  %v793_v32 = vor.u32 %v989_v27, %v792_v26  ;;  %v990_v33 = vld [vmem:[#allocation2 + $0xb4] sm:$0xf0] }
  0x15   :  { %v988_v34 = vld [vmem:[#allocation2 + $0xac] sm:$0xf]  ;;  %v802_v35 = vld [vmem:[#allocation2 + $0xb8] sm:$0xf0]  ;;  %v797_v36 = vor.u32 %v987_v29, %v794_v30  ;;  %v776_v37 = vld [vmem:[#allocation2 + $0x80] sm:$0xf]  ;;  %v801_v40 = vor.u32 %v990_v33, %v800_v31 }
  0x16   :  { %314 = vmatpush.bf16.msra.mxu2 %v813_v20  ;;  %v985_v38 = vld [vmem:[#allocation2 + $0x8c] sm:$0xf0]  ;;  %v983_v39 = vld [vmem:[#allocation2 + $0x84] sm:$0xf]  ;;  %328 = vmatpush.bf16.msra.mxu3 %v817_v24  ;;  %v805_v41 = vor.u32 %v988_v34, %v802_v35  ;;  %v778_v42 = vld [vmem:[#allocation2 + $0x90] sm:$0xf0] }
  0x17   :  { %342 = vmatpush.bf16.msrb.mxu0 %v821_v28  ;;  %v784_v43 = vld [vmem:[#allocation2 + $0x88] sm:$0xf]  ;;  %v986_v44 = vld [vmem:[#allocation2 + $0x94] sm:$0xf0]  ;;  %v984_v45 = vld [vmem:[#allocation2 + $0x8c] sm:$0xf]  ;;  %v777_v47 = vor.u32 %v985_v38, %v776_v37  ;;  %v781_v48 = vor.u32 %v983_v39, %v778_v42 }
  0x18   :  { %v786_v46 = vld [vmem:[#allocation2 + $0x98] sm:$0xf0]  ;;  %301 = vmatpush.bf16.msra.mxu1 %v793_v32  ;;  %v785_v49 = vor.u32 %v986_v44, %v784_v43  ;;  %v760_v51 = vld [vmem:[#allocation2 + $0x60] sm:$0xf]  ;;  %v981_v52 = vld [vmem:[#allocation2 + $0x6c] sm:$0xf0] }
  0x19   :  { %v789_v50 = vor.u32 %v984_v45, %v786_v46  ;;  %v979_v53 = vld [vmem:[#allocation2 + $0x64] sm:$0xf]  ;;  %v761_v54 = vor.u32 %v981_v52, %v760_v51  ;;  %v762_v55 = vld [vmem:[#allocation2 + $0x70] sm:$0xf0]  ;;  %v768_v56 = vld [vmem:[#allocation2 + $0x68] sm:$0xf] }
  0x1a   :  { %315 = vmatpush.bf16.msra.mxu2 %v797_v36  ;;  %329 = vmatpush.bf16.msra.mxu3 %v801_v40  ;;  %v982_v57 = vld [vmem:[#allocation2 + $0x74] sm:$0xf0]  ;;  %v765_v58 = vor.u32 %v979_v53, %v762_v55  ;;  %v980_v60 = vld [vmem:[#allocation2 + $0x6c] sm:$0xf]  ;;  %v770_v61 = vld [vmem:[#allocation2 + $0x78] sm:$0xf0] }
  0x1b   :  { %343 = vmatpush.bf16.msrb.mxu0 %v805_v41  ;;  %v769_v59 = vor.u32 %v982_v57, %v768_v56  ;;  %v773_v62 = vor.u32 %v980_v60, %v770_v61  ;;  %v744_v63 = vld [vmem:[#allocation2 + $0x40] sm:$0xf]  ;;  %v977_v0 = vld [vmem:[#allocation2 + $0x4c] sm:$0xf0]  ;;  %v975_v1 = vld [vmem:[#allocation2 + $0x44] sm:$0xf] }
  0x1c   :  { %302 = vmatpush.bf16.msra.mxu1 %v777_v47  ;;  %v745_v2 = vor.u32 %v977_v0, %v744_v63  ;;  %v746_v3 = vld [vmem:[#allocation2 + $0x50] sm:$0xf0]  ;;  %v752_v4 = vld [vmem:[#allocation2 + $0x48] sm:$0xf]  ;;  %v978_v5 = vld [vmem:[#allocation2 + $0x54] sm:$0xf0] }
  0x1d   :  { %v749_v6 = vor.u32 %v975_v1, %v746_v3  ;;  %v753_v7 = vor.u32 %v978_v5, %v752_v4  ;;  %v976_v8 = vld [vmem:[#allocation2 + $0x4c] sm:$0xf]  ;;  %v754_v9 = vld [vmem:[#allocation2 + $0x58] sm:$0xf0]  ;;  %v728_v11 = vld [vmem:[#allocation2 + $0x20] sm:$0xf] }
  0x1e   :  { %316 = vmatpush.bf16.msra.mxu2 %v781_v48  ;;  %330 = vmatpush.bf16.msra.mxu3 %v785_v49  ;;  %v757_v10 = vor.u32 %v976_v8, %v754_v9  ;;  %v973_v12 = vld [vmem:[#allocation2 + $0x2c] sm:$0xf0]  ;;  %v971_v13 = vld [vmem:[#allocation2 + $0x24] sm:$0xf]  ;;  %v730_v15 = vld [vmem:[#allocation2 + $0x30] sm:$0xf0] }
  0x1f   :  { %344 = vmatpush.bf16.msrb.mxu0 %v789_v50  ;;  %v729_v14 = vor.u32 %v973_v12, %v728_v11  ;;  %v736_v16 = vld [vmem:[#allocation2 + $0x28] sm:$0xf]  ;;  %v974_v17 = vld [vmem:[#allocation2 + $0x34] sm:$0xf0]  ;;  %v733_v18 = vor.u32 %v971_v13, %v730_v15  ;;  %v972_v20 = vld [vmem:[#allocation2 + $0x2c] sm:$0xf] }
  0x20   :  { %303 = vmatpush.bf16.msra.mxu1 %v761_v54  ;;  %v737_v19 = vor.u32 %v974_v17, %v736_v16  ;;  %v738_v21 = vld [vmem:[#allocation2 + $0x38] sm:$0xf0]  ;;  %v712_v23 = vld [vmem:[#allocation2] sm:$0xf]  ;;  %v969_v24 = vld [vmem:[#allocation2 + $0xc] sm:$0xf0] }
  0x21   :  { %v741_v22 = vor.u32 %v972_v20, %v738_v21  ;;  %v967_v25 = vld [vmem:[#allocation2 + $0x4] sm:$0xf]  ;;  %v713_v26 = vor.u32 %v969_v24, %v712_v23  ;;  %v714_v27 = vld [vmem:[#allocation2 + $0x10] sm:$0xf0]  ;;  %v720_v28 = vld [vmem:[#allocation2 + $0x8] sm:$0xf] }
  0x22   :  { %317 = vmatpush.bf16.msra.mxu2 %v765_v58  ;;  %331 = vmatpush.bf16.msra.mxu3 %v769_v59  ;;  %v970_v29 = vld [vmem:[#allocation2 + $0x14] sm:$0xf0]  ;;  %v717_v30 = vor.u32 %v967_v25, %v714_v27  ;;  %v968_v32 = vld [vmem:[#allocation2 + $0xc] sm:$0xf]  ;;  %v722_v33 = vld [vmem:[#allocation2 + $0x18] sm:$0xf0] }
  0x23   :  { %345 = vmatpush.bf16.msrb.mxu0 %v773_v62  ;;  %v721_v31 = vor.u32 %v970_v29, %v720_v28  ;;  %v725_v34 = vor.u32 %v968_v32, %v722_v33  ;;  %v1006_v35 = vld [vmem:[#allocation5 + $0x38] sm:$0xff]  ;;  %v1005_v39 = vld [vmem:[#allocation5 + $0x30] sm:$0xff]  ;;  %v1004_v43 = vld [vmem:[#allocation5 + $0x28] sm:$0xff]  ;;  %s691_s23 = sshll.u32 %s1201_s7, 4  ;;  %s1128_s24 = smov 8   ;;  %s692_s23 = int_to_ptr.hbm [resolvable:$true] %s691_s23 }
  0x24   :  { %304 = vmatpush.bf16.msra.mxu1 %v745_v2  ;;  %v1030_v36 = vld [vmem:[#allocation5 + $0xf8] sm:$0xff]  ;;  %v1029_v40 = vld [vmem:[#allocation5 + $0xf0] sm:$0xff]  ;;  %v1028_v44 = vld [vmem:[#allocation5 + $0xe8] sm:$0xff] }
  0x25   :  { %v1014_v37 = vld [vmem:[#allocation5 + $0x78] sm:$0xff]  ;;  %v1013_v41 = vld [vmem:[#allocation5 + $0x70] sm:$0xff]  ;;  %v1012_v45 = vld [vmem:[#allocation5 + $0x68] sm:$0xff] }
  0x26   :  { %318 = vmatpush.bf16.msra.mxu2 %v749_v6  ;;  %332 = vmatpush.bf16.msra.mxu3 %v753_v7  ;;  %v1022_v38 = vld [vmem:[#allocation5 + $0xb8] sm:$0xff]  ;;  %v1021_v42 = vld [vmem:[#allocation5 + $0xb0] sm:$0xff]  ;;  %v1020_v46 = vld [vmem:[#allocation5 + $0xa8] sm:$0xff] }
  0x27   :  { %346 = vmatpush.bf16.msrb.mxu0 %v757_v10  ;;  %v1003_v47 = vld [vmem:[#allocation5 + $0x20] sm:$0xff]  ;;  %v1002_v57 = vld [vmem:[#allocation5 + $0x18] sm:$0xff]  ;;  %v1001_v61 = vld [vmem:[#allocation5 + $0x10] sm:$0xff] }
  0x28   :  { %305 = vmatpush.bf16.msra.mxu1 %v729_v14  ;;  %v1027_v48 = vld [vmem:[#allocation5 + $0xe0] sm:$0xff]  ;;  %v1026_v58 = vld [vmem:[#allocation5 + $0xd8] sm:$0xff]  ;;  %v1025_v62 = vld [vmem:[#allocation5 + $0xd0] sm:$0xff] }
  0x29   :  { %v1040_v50 = vld [vmem:[%s1196_s2] ss:$0 sm:$0xff]  ;;  %v1010_v63 = vld [vmem:[#allocation5 + $0x58] sm:$0xff]  ;;  %v1000_v1 = vld [vmem:[#allocation5 + $0x8] sm:$0xff] }
  0x2a   :  { %319 = vmatpush.bf16.msra.mxu2 %v733_v18  ;;  %333 = vmatpush.bf16.msra.mxu3 %v737_v19  ;;  %v1011_v59 = vld [vmem:[#allocation5 + $0x60] sm:$0xff]  ;;  %v1018_v0 = vld [vmem:[#allocation5 + $0x98] sm:$0xff]  ;;  %v1024_v2 = vld [vmem:[#allocation5 + $0xc8] sm:$0xff] }
  0x2b   :  { %347 = vmatpush.bf16.msrb.mxu0 %v741_v22  ;;  %v1019_v60 = vld [vmem:[#allocation5 + $0xa0] sm:$0xff]  ;;  %v1009_v3 = vld [vmem:[#allocation5 + $0x50] sm:$0xff]  ;;  %v1008_v7 = vld [vmem:[#allocation5 + $0x48] sm:$0xff] }
  0x2c   :  { %306 = vmatpush.bf16.msra.mxu1 %v713_v26  ;;  %v1017_v4 = vld [vmem:[#allocation5 + $0x90] sm:$0xff]  ;;  %v999_v5 = vld [vmem:[#allocation5] sm:$0xff]  ;;  %v1016_v8 = vld [vmem:[#allocation5 + $0x88] sm:$0xff] }
  0x2d   :  { %v1023_v6 = vld [vmem:[#allocation5 + $0xc0] sm:$0xff] }
  0x2e   :  { %320 = vmatpush.bf16.msra.mxu2 %v717_v30  ;;  %334 = vmatpush.bf16.msra.mxu3 %v721_v31  ;;  %v1007_v9 = vld [vmem:[#allocation5 + $0x40] sm:$0xff] }
  0x2f   :  { %348 = vmatpush.bf16.msrb.mxu0 %v725_v34  ;;  %v1015_v10 = vld [vmem:[#allocation5 + $0x80] sm:$0xff] }
  0x30   :  { %627 = vmatpush.bf16.msrb.mxu1 %v1006_v35  ;;  %v129_v11 = vld [vmem:[%s1198_s4] sm:$0xf] }
  0x31   :  { %v131_v14 = vperm.slane %v129_v11, 0  ;;  %v134_v15 = vperm.slane %v129_v11, 3  ;;  %v132_v21 = vperm.slane %v129_v11, 1  ;;  %v133_v24 = vperm.slane %v129_v11, 2 }
  0x32   :  { %641 = vmatpush.bf16.msrb.mxu2 %v1014_v37  ;;  %655 = vmatpush.bf16.msrb.mxu3 %v1022_v38 }
  0x33   :  { %669 = vmatpush.bf16.msra.mxu0 %v1030_v36 }
  0x34   :  { %628 = vmatpush.bf16.msrb.mxu1 %v1005_v39 }
  0x36   :  { %642 = vmatpush.bf16.msrb.mxu2 %v1013_v41  ;;  %656 = vmatpush.bf16.msrb.mxu3 %v1021_v42 }
  0x37   :  { %670 = vmatpush.bf16.msra.mxu0 %v1029_v40 }
  0x38   :  { %629 = vmatpush.bf16.msrb.mxu1 %v1004_v43 }
  0x3a   :  { %643 = vmatpush.bf16.msrb.mxu2 %v1012_v45  ;;  %657 = vmatpush.bf16.msrb.mxu3 %v1020_v46  ;;  %v1041_v45 = vld [vmem:[%s1200_s6] ss:$0 sm:$0xff]  ;;  %s1127_s6 = smov 128  }
  0x3b   :  { %671 = vmatpush.bf16.msra.mxu0 %v1028_v44 }
  0x3c   :  { %630 = vmatpush.bf16.msrb.mxu1 %v1003_v47 }
  0x3e   :  { %644 = vmatpush.bf16.msrb.mxu2 %v1011_v59  ;;  %658 = vmatpush.bf16.msrb.mxu3 %v1019_v60 }
  0x3f   :  { %672 = vmatpush.bf16.msra.mxu0 %v1027_v48 }
  0x40   :  { %631 = vmatpush.bf16.msrb.mxu1 %v1002_v57 }
  0x42   :  { %645 = vmatpush.bf16.msrb.mxu2 %v1010_v63  ;;  %659 = vmatpush.bf16.msrb.mxu3 %v1018_v0 }
  0x43   :  { %673 = vmatpush.bf16.msra.mxu0 %v1026_v58 }
  0x44   :  { %632 = vmatpush.bf16.msrb.mxu1 %v1001_v61 }
  0x46   :  { %646 = vmatpush.bf16.msrb.mxu2 %v1009_v3  ;;  %660 = vmatpush.bf16.msrb.mxu3 %v1017_v4 }
  0x47   :  { %674 = vmatpush.bf16.msra.mxu0 %v1025_v62 }
  0x48   :  { %633 = vmatpush.bf16.msrb.mxu1 %v1000_v1 }
  0x4a   :  { %647 = vmatpush.bf16.msrb.mxu2 %v1008_v7  ;;  %661 = vmatpush.bf16.msrb.mxu3 %v1016_v8 }
  0x4b   :  { %675 = vmatpush.bf16.msra.mxu0 %v1024_v2 }
  0x4c   :  { %634 = vmatpush.bf16.msrb.mxu1 %v999_v5 }
  0x4e   :  { %648 = vmatpush.bf16.msrb.mxu2 %v1007_v9  ;;  %662 = vmatpush.bf16.msrb.mxu3 %v1015_v10 }
  0x4f   :  { %676 = vmatpush.bf16.msra.mxu0 %v1023_v6 }
  0x8e   :  { %v89_v49 = vpop.f32.mrf.mxu0 }
  0x8f   :  { %v90_v51 = vadd.f32 %v1040_v50, %v89_v49 }
  0x91   :  { %v94_v54 = vmax.f32 %v90_v51, 0.0 }
  0x96   :  { %v91_v52 = vpop.f32.mrf.mxu0 }
  0x97   :  { %v92_v53 = vadd.f32 %v1040_v50, %v91_v52 }
  0x99   :  { %v95_v55 = vmax.f32 %v92_v53, 0.0 }
  0x9b   :  { %v96_v56 = vpack.c.bf16 %v95_v55, %v94_v54 }
  0x9d   :  { %307 = vmatmul.bf16.vlgmr.msra.gmra.mxu1 %v96_v56  ;;  %321 = vmatmul.bf16.vlgmr.msra.gmra.mxu2 %v96_v56 }
  0x9e   :  { %335 = vmatmul.bf16.vlgmr.msra.gmra.mxu3 %v96_v56  ;;  %349 = vmatmul.bf16.vlgmr.msrb.gmra.mxu0 %v96_v56 }
 0x11a   :  { %v308_v12 = vpop.f32.mrf.mxu1 }
 0x11b   :  { %v350_v13 = vpop.f32.mrf.mxu0  ;;  %v309_v17 = vadd.f32 %v308_v12, %v131_v14 }
 0x11c   :  { %v351_v19 = vadd.f32 %v350_v13, %v134_v15 }
 0x11d   :  { %v355_v26 = vmax.f32 %v309_v17, 0.0 }
 0x11e   :  { %v358_v28 = vmax.f32 %v351_v19, 0.0 }
 0x120   :  { %v322_v16 = vpop.f32.mrf.mxu2 }
 0x121   :  { %v336_v18 = vpop.f32.mrf.mxu3  ;;  %v323_v30 = vadd.f32 %v322_v16, %v132_v21 }
 0x122   :  { %v310_v20 = vpop.f32.mrf.mxu1  ;;  %v337_v32 = vadd.f32 %v336_v18, %v133_v24 }
 0x123   :  { %v311_v22 = vadd.f32 %v310_v20, %v131_v14  ;;  %v352_v23 = vpop.f32.mrf.mxu0  ;;  %v356_v38 = vmax.f32 %v323_v30, 0.0 }
 0x124   :  { %v353_v25 = vadd.f32 %v352_v23, %v134_v15  ;;  %v357_v40 = vmax.f32 %v337_v32, 0.0 }
 0x125   :  { %v359_v27 = vmax.f32 %v311_v22, 0.0 }
 0x126   :  { %v362_v29 = vmax.f32 %v353_v25, 0.0 }
 0x127   :  { %v363_v31 = vpack.c.bf16 %v359_v27, %v355_v26 }
 0x128   :  { %v366_v33 = vpack.c.bf16 %v362_v29, %v358_v28  ;;  %v324_v34 = vpop.f32.mrf.mxu2 }
 0x129   :  { %v325_v35 = vadd.f32 %v324_v34, %v132_v21  ;;  %v338_v36 = vpop.f32.mrf.mxu3  ;;  %635 = vmatmul.bf16.vlgmr.msrb.gmra.mxu1 %v363_v31 }
 0x12a   :  { %v339_v37 = vadd.f32 %v338_v36, %v133_v24  ;;  %677 = vmatmul.bf16.vlgmr.msra.gmra.mxu0 %v366_v33 }
 0x12b   :  { %v360_v39 = vmax.f32 %v325_v35, 0.0 }
 0x12c   :  { %v361_v41 = vmax.f32 %v339_v37, 0.0 }
 0x12d   :  { %v364_v42 = vpack.c.bf16 %v360_v39, %v356_v38 }
 0x12e   :  { %v365_v43 = vpack.c.bf16 %v361_v41, %v357_v40 }
 0x12f   :  { %649 = vmatmul.bf16.vlgmr.msrb.gmra.mxu2 %v364_v42 }
 0x130   :  { %663 = vmatmul.bf16.vlgmr.msrb.gmra.mxu3 %v365_v43 }
 0x1a6   :  { %v636_v44 = vpop.f32.mrf.mxu1 }
 0x1a7   :  { %v637_v46 = vadd.f32 %v1041_v45, %v636_v44  ;;  %v678_v50 = vpop.f32.mrf.mxu0 }
 0x1ae   :  { %v638_v52 = vpop.f32.mrf.mxu1 }
 0x1af   :  { %v639_v54 = vadd.f32 %v1041_v45, %v638_v52  ;;  %v680_v59 = vpop.f32.mrf.mxu0 }
 0x1b2   :  { %v650_v47 = vpop.f32.mrf.mxu2 }
 0x1b3   :  { %v651_v48 = vadd.f32 %v650_v47, %v637_v46  ;;  %v664_v49 = vpop.f32.mrf.mxu3 }
 0x1b5   :  { %v665_v51 = vadd.f32 %v664_v49, %v651_v48 }
 0x1b7   :  { %v679_v53 = vadd.f32 %v678_v50, %v665_v51 }
 0x1b9   :  { %683 = vst [vmem:[#allocation7] sm:$0xff] %v679_v53 }
 0x1ba   :  { %v652_v55 = vpop.f32.mrf.mxu2 }
 0x1bb   :  { %v653_v56 = vadd.f32 %v652_v55, %v639_v54  ;;  %v666_v57 = vpop.f32.mrf.mxu3 }
 0x1bd   :  { %v667_v58 = vadd.f32 %v666_v57, %v653_v56 }
 0x1bf   :  { %v681_v60 = vadd.f32 %v680_v59, %v667_v58 }
 0x1c1   :  { %684 = vst [vmem:[#allocation7 + $0x8] sm:$0xff] %v681_v60 }
 0x1c2   :  { %697 = dma.vmem_to_hbm [thread:$0]  %s690_s20, 256, %s692_s23, [#allocation4], %s1127_s6, %s1127_s6, %s1128_s24  }
 0x1c3   :  { %1118 = dma.done.wait [#allocation4], 256  }
 0x1c4   :  { %1119 = vsyncadd [#allocation4], 4294967040 }
 0x1c5   :  { %702 = vsyncpa [#allocation3], 1 }
 0x1c6   :  { %703 = vsyncpa [#allocation6], 1 }
 0x1c7   :  { %704 = vsyncpa [#allocation4], 1 }

</bundles_post_ra>
